<compile_context>
chip_gen: v5e
topology: v5e:2x2
jax: 0.10.0
libtpu: 0.0.40
codegen_flags: <defaults>
</compile_context>

<pallas_src>
import jax
import jax.numpy as jnp
from jax.experimental import pallas as pl
from jax.experimental.pallas import tpu as pltpu

LANE = 128          # vreg lane width
SUBLANE = 8         # vreg sublane count (f32)
_HEADROOM = 4 * 1024 * 1024       # fixed headroom folded into the VMEM budget
_VMEM_RESERVE = 8 * 1024 * 1024   # physical VMEM left to the compiler/runtime


def _round_up(x: int, m: int) -> int:
    return ((x + m - 1) // m) * m


def _pad_dim(d: int) -> int:
    # Lane-align only dims that span at least one full lane. Tiny dims stay
    # unpadded (block shape == full array dim is always legal) so we never
    # inflate MXU work 16x for e.g. latent_dim=8.
    return d if d <= LANE else _round_up(d, LANE)


def _vmem_capacity_bytes() -> int:
    try:
        return int(pltpu.get_tpu_info().vmem_capacity_bytes)
    except Exception:
        return 128 * 1024 * 1024   # v5e/v6e physical; v7x reports its own 64 MiB


def vae_decoder_kernel(z_ref, w1_ref, b1_ref, w2_ref, b2_ref, w3_ref, b3_ref,
                       out_ref):
    """Fused 3-layer MLP on one batch tile (Dropout = identity in eval)."""
    wdt = w1_ref.dtype                       # bf16 weights (f32 also works)
    z = z_ref[...].astype(wdt)               # no-op on the tiled path (z already wdt)

    # Layer 1: Linear + ReLU (bias-add fused with ReLU in one VPU pass).
    h1 = jnp.dot(z, w1_ref[...], preferred_element_type=jnp.float32)
    h1 = jnp.maximum(h1 + b1_ref[...], 0.0)

    # Layer 2: Linear + ReLU.
    h2 = jnp.dot(h1.astype(wdt), w2_ref[...], preferred_element_type=jnp.float32)
    h2 = jnp.maximum(h2 + b2_ref[...], 0.0)

    # Layer 3: Linear (output).
    out = jnp.dot(h2.astype(wdt), w3_ref[...], preferred_element_type=jnp.float32)
    out_ref[...] = (out + b3_ref[...]).astype(out_ref.dtype)


def prepare_params(params):
    """One-time padding of the weight/bias feature axes (outside the forward).

    params: dict with w1 [L, H/2], b1 [1, H/2], w2 [H/2, H], b2 [1, H],
            w3 [H, O], b3 [1, O]  (weights may be bf16 or f32, biases f32).
    Returns a dict holding the (possibly) padded arrays plus logical/padded
    dims, so vae_decoder_forward never touches the raw weights again.
    """
    L, H2 = params["w1"].shape
    H = params["w2"].shape[1]
    O = params["w3"].shape[1]
    Lp, H2p, Hp, Op = (_pad_dim(d) for d in (L, H2, H, O))

    def pad2(a, rows, cols):
        a = a.astype(a.dtype)
        if a.shape == (rows, cols):
            return a
        return jnp.zeros((rows, cols), a.dtype).at[:a.shape[0], :a.shape[1]].set(a)

    return {
        "w1": pad2(params["w1"], Lp, H2p),
        "b1": pad2(params["b1"].astype(jnp.float32), 1, H2p),
        "w2": pad2(params["w2"], H2p, Hp),
        "b2": pad2(params["b2"].astype(jnp.float32), 1, Hp),
        "w3": pad2(params["w3"], Hp, Op),
        "b3": pad2(params["b3"].astype(jnp.float32), 1, Op),
        "logical_dims": (L, H2, H, O),
        "padded_dims": (Lp, H2p, Hp, Op),
    }


def _choose_tm(B, Lp, H2p, Hp, Op, wbytes, usable_vmem):
    """Largest batch tile whose exact VMEM need fits, with >=2 tiles if B allows."""
    # Single-buffered VMEM-resident weights/biases.
    resident = (Lp * H2p + H2p * Hp + Hp * Op) * wbytes + (H2p + Hp + Op) * 4

    def need(tm):
        act = 2 * tm * (Lp * wbytes + Op * 4)              # double-buffered z / out tiles
        inter = tm * (H2p + Hp) * (4 + wbytes) + tm * Op * 4  # h1/h2 f32 + wdt copies, f32 out
        return resident + act + inter + _HEADROOM

    # Cap TM so the batch grid has at least 2 steps whenever the batch allows
    # it (so dimension_semantics=("parallel",) can shard across v7x's 2 TCs).
    if B > SUBLANE:
        tm_cap = _round_up(max((B + 1) // 2, 1), SUBLANE)
    else:
        tm_cap = _round_up(B, SUBLANE)

    for tm in (512, 256, 128, 64, 32, 16, 8):
        if tm <= tm_cap and need(tm) <= usable_vmem:
            return tm, need(tm)
    # TODO(synk): K/N-tile layers 2/3 with an accumulator scratch when the
    # resident weight set alone exceeds VMEM (very large hidden dims on v7x).
    return SUBLANE, min(need(SUBLANE), usable_vmem)


def vae_decoder_forward(z, prepared, *, small_batch_limit: int = 256):
    """Run the fused decoder.

    z:        [B, latent_dim] float32
    prepared: output of prepare_params(params)
    returns:  [B, output_dim] float32
    """
    B, L = z.shape
    Ll, H2, H, O = prepared["logical_dims"]
    assert L == Ll, (L, Ll)
    Lp, H2p, Hp, Op = prepared["padded_dims"]
    w1, b1 = prepared["w1"], prepared["b1"]
    w2, b2 = prepared["w2"], prepared["b2"]
    w3, b3 = prepared["w3"], prepared["b3"]
    wdt = w1.dtype
    wbytes = jnp.dtype(wdt).itemsize

    flops = 2 * B * (Lp * H2p + H2p * Hp + Hp * Op)
    bytes_accessed = (B * Lp * wbytes + B * Op * 4
                      + (Lp * H2p + H2p * Hp + Hp * Op) * wbytes
                      + (H2p + Hp + Op) * 4)
    cost = pl.CostEstimate(flops=flops, transcendentals=0,
                           bytes_accessed=bytes_accessed)

    # --- Tiny path: all feature dims fit in one lane and the batch is small.
    # No padding, no grid, no pipeline machinery — one full-array call.
    if max(Lp, H2p, Hp, Op) <= LANE and B <= small_batch_limit:
        return pl.pallas_call(
            vae_decoder_kernel,
            out_shape=jax.ShapeDtypeStruct((B, O), jnp.float32),
            cost_estimate=cost,
        )(z.astype(jnp.float32), w1, b1, w2, b2, w3, b3)

    # --- Tiled path: 1-D batch grid, VMEM-resident single-buffered weights.
    usable_vmem = _vmem_capacity_bytes() - _VMEM_RESERVE
    TM, vmem_need = _choose_tm(B, Lp, H2p, Hp, Op, wbytes, usable_vmem)
    Bp = _round_up(B, TM)

    # Cast activations to the weight dtype in the wrapper (halves the only
    # recurring per-step input DMA); pad rows/cols only when necessary.
    zp = z.astype(wdt)
    if zp.shape != (Bp, Lp):
        zp = jnp.zeros((Bp, Lp), wdt).at[:B, :L].set(zp)

    grid = (Bp // TM,)

    def resident(shape):
        # Constant index_map -> the block never changes; a second pipeline
        # buffer would be pure VMEM waste, so single-buffer it.
        return pl.BlockSpec(shape, lambda i: (0, 0),
                            pipeline_mode=pl.Buffered(1))

    in_specs = [
        pl.BlockSpec((TM, Lp), lambda i: (i, 0)),   # z tile (pipelined)
        resident((Lp, H2p)), resident((1, H2p)),    # W1, b1
        resident((H2p, Hp)), resident((1, Hp)),     # W2, b2
        resident((Hp, Op)), resident((1, Op)),      # W3, b3
    ]
    out_specs = pl.BlockSpec((TM, Op), lambda i: (i, 0))

    vmem_limit = int(min(max(vmem_need, 16 * 1024 * 1024), usable_vmem))

    out_padded = pl.pallas_call(
        vae_decoder_kernel,
        out_shape=jax.ShapeDtypeStruct((Bp, Op), jnp.float32),
        grid=grid,
        in_specs=in_specs,
        out_specs=out_specs,
        compiler_params=pltpu.CompilerParams(
            dimension_semantics=("parallel",),   # batch tiles shard across TCs
            vmem_limit_bytes=vmem_limit),
        cost_estimate=cost,
    )(zp, w1, b1, w2, b2, w3, b3)

    if (Bp, Op) == (B, O):
        return out_padded
    return out_padded[:B, :O]


def init_params(key, latent_dim, hidden_dim, output_dim,
                weight_dtype=jnp.bfloat16):
    """Deterministic init mimicking nn.Linear default (uniform +-1/sqrt(fan_in)).

    Weights stored as [in, out] (transposed vs PyTorch) in `weight_dtype`
    (bf16 halves HBM traffic / VMEM; pass jnp.float32 for bit-closeness to an
    f32 PyTorch model); biases stay f32.
    """
    h2 = hidden_dim // 2

    def linear(k, fan_in, fan_out):
        kw, kb = jax.random.split(k)
        bound = 1.0 / (fan_in ** 0.5)
        w = jax.random.uniform(kw, (fan_in, fan_out), jnp.float32,
                               minval=-bound, maxval=bound).astype(weight_dtype)
        b = jax.random.uniform(kb, (1, fan_out), jnp.float32,
                               minval=-bound, maxval=bound)
        return w, b

    k1, k2, k3 = jax.random.split(key, 3)
    w1, b1 = linear(k1, latent_dim, h2)
    w2, b2 = linear(k2, h2, hidden_dim)
    w3, b3 = linear(k3, hidden_dim, output_dim)
    return {"w1": w1, "b1": b1, "w2": w2, "b2": b2, "w3": w3, "b3": b3}


def reference_forward(z, p):
    """Plain-JAX reference (eval mode) with the same weight-dtype / f32-acc
    numerics as the kernel, using the UNPADDED params."""
    wdt = p["w1"].dtype
    f32 = jnp.float32
    h1 = jnp.maximum(
        jnp.dot(z.astype(wdt), p["w1"], preferred_element_type=f32) + p["b1"], 0.0)
    h2 = jnp.maximum(
        jnp.dot(h1.astype(wdt), p["w2"], preferred_element_type=f32) + p["b2"], 0.0)
    return jnp.dot(h2.astype(wdt), p["w3"], preferred_element_type=f32) + p["b3"]


if __name__ == "__main__":
    key = jax.random.PRNGKey(0)
    k1, k2, k3, k4 = jax.random.split(key, 4)

    # --- Test 1: tiny demo shapes -> un-padded single-call fast path.
    params_s = init_params(k1, latent_dim=8, hidden_dim=32, output_dim=16)
    prep_s = prepare_params(params_s)          # padding happens once, here
    z_s = jax.random.normal(k2, (8, 8), jnp.float32)
    out_s = jax.block_until_ready(vae_decoder_forward(z_s, prep_s))
    ref_s = reference_forward(z_s, params_s)
    assert out_s.shape == (8, 16), out_s.shape
    assert jnp.allclose(out_s, ref_s, atol=1e-3, rtol=1e-3), "small path mismatch"

    # --- Test 2: lane-padded, batch-tiled path (grid > 1, padded H/2 and O).
    params_t = init_params(k3, latent_dim=32, hidden_dim=384, output_dim=200)
    prep_t = prepare_params(params_t)
    z_t = jax.random.normal(k4, (192, 32), jnp.float32)
    out_t = jax.block_until_ready(vae_decoder_forward(z_t, prep_t))
    ref_t = reference_forward(z_t, params_t)
    assert out_t.shape == (192, 200), out_t.shape
    assert jnp.allclose(out_t, ref_t, atol=2e-2, rtol=2e-2), "tiled path mismatch"

    print("KERNEL_OK")
</pallas_src>

<mosaic_0001>
module attributes {stable_mosaic.version = 11 : i64} {
  func.func @vae_decoder_kernel(%arg0: memref<8x8xf32, #tpu.memory_space<vmem>>, %arg1: memref<8x16xbf16, #tpu.memory_space<vmem>>, %arg2: memref<1x16xf32, #tpu.memory_space<vmem>>, %arg3: memref<16x32xbf16, #tpu.memory_space<vmem>>, %arg4: memref<1x32xf32, #tpu.memory_space<vmem>>, %arg5: memref<32x16xbf16, #tpu.memory_space<vmem>>, %arg6: memref<1x16xf32, #tpu.memory_space<vmem>>, %arg7: memref<8x16xf32, #tpu.memory_space<vmem>>) attributes {dimension_semantics = [], scalar_prefetch = 0 : i64, scratch_operands = 0 : i64, tpu.core_type = #tpu.core_type<tc>} {
    %c0 = arith.constant 0 : index
    %c0_0 = arith.constant 0 : index
    %0 = vector.load %arg0[%c0, %c0_0] : memref<8x8xf32, #tpu.memory_space<vmem>>, vector<8x8xf32>
    %1 = arith.truncf %0 : vector<8x8xf32> to vector<8x8xbf16>
    %c0_1 = arith.constant 0 : index
    %c0_2 = arith.constant 0 : index
    %2 = vector.load %arg1[%c0_1, %c0_2] : memref<8x16xbf16, #tpu.memory_space<vmem>>, vector<8x16xbf16>
    %cst = arith.constant dense<0.000000e+00> : vector<8x16xf32>
    %3 = tpu.matmul %1, %2, %cst {dimension_numbers = #tpu.dot_dimension_numbers<[1], [0], [0], [1], [0, 0, 1, 1], [], []>} : vector<8x8xbf16>, vector<8x16xbf16>, vector<8x16xf32> -> vector<8x16xf32>
    %c0_3 = arith.constant 0 : index
    %c0_4 = arith.constant 0 : index
    %4 = vector.load %arg2[%c0_3, %c0_4] : memref<1x16xf32, #tpu.memory_space<vmem>>, vector<1x16xf32>
    %5 = vector.broadcast %4 : vector<1x16xf32> to vector<8x16xf32>
    %6 = arith.addf %3, %5 : vector<8x16xf32>
    %cst_5 = arith.constant 0.000000e+00 : f32
    %7 = vector.broadcast %cst_5 : f32 to vector<8x16xf32>
    %8 = arith.maximumf %6, %7 : vector<8x16xf32>
    %9 = arith.truncf %8 : vector<8x16xf32> to vector<8x16xbf16>
    %c0_6 = arith.constant 0 : index
    %c0_7 = arith.constant 0 : index
    %10 = vector.load %arg3[%c0_6, %c0_7] : memref<16x32xbf16, #tpu.memory_space<vmem>>, vector<16x32xbf16>
    %cst_8 = arith.constant dense<0.000000e+00> : vector<8x32xf32>
    %11 = tpu.matmul %9, %10, %cst_8 {dimension_numbers = #tpu.dot_dimension_numbers<[1], [0], [0], [1], [0, 0, 1, 1], [], []>} : vector<8x16xbf16>, vector<16x32xbf16>, vector<8x32xf32> -> vector<8x32xf32>
    %c0_9 = arith.constant 0 : index
    %c0_10 = arith.constant 0 : index
    %12 = vector.load %arg4[%c0_9, %c0_10] : memref<1x32xf32, #tpu.memory_space<vmem>>, vector<1x32xf32>
    %13 = vector.broadcast %12 : vector<1x32xf32> to vector<8x32xf32>
    %14 = arith.addf %11, %13 : vector<8x32xf32>
    %cst_11 = arith.constant 0.000000e+00 : f32
    %15 = vector.broadcast %cst_11 : f32 to vector<8x32xf32>
    %16 = arith.maximumf %14, %15 : vector<8x32xf32>
    %17 = arith.truncf %16 : vector<8x32xf32> to vector<8x32xbf16>
    %c0_12 = arith.constant 0 : index
    %c0_13 = arith.constant 0 : index
    %18 = vector.load %arg5[%c0_12, %c0_13] : memref<32x16xbf16, #tpu.memory_space<vmem>>, vector<32x16xbf16>
    %cst_14 = arith.constant dense<0.000000e+00> : vector<8x16xf32>
    %19 = tpu.matmul %17, %18, %cst_14 {dimension_numbers = #tpu.dot_dimension_numbers<[1], [0], [0], [1], [0, 0, 1, 1], [], []>} : vector<8x32xbf16>, vector<32x16xbf16>, vector<8x16xf32> -> vector<8x16xf32>
    %c0_15 = arith.constant 0 : index
    %c0_16 = arith.constant 0 : index
    %20 = vector.load %arg6[%c0_15, %c0_16] : memref<1x16xf32, #tpu.memory_space<vmem>>, vector<1x16xf32>
    %21 = vector.broadcast %20 : vector<1x16xf32> to vector<8x16xf32>
    %22 = arith.addf %19, %21 : vector<8x16xf32>
    %c0_17 = arith.constant 0 : index
    %c0_18 = arith.constant 0 : index
    %23 = vector.load %arg7[%c0_17, %c0_18] : memref<8x16xf32, #tpu.memory_space<vmem>>, vector<8x16xf32>
    tpu.vector_store %arg7[%c0_17, %c0_18], %22 {strides = array<i32>} : memref<8x16xf32, #tpu.memory_space<vmem>>, vector<8x16xf32>,
    return
  }
}

</mosaic_0001>

<bundles_post_ra>
// kernel: tpu_custom_call.1
= control target key start
LH: loop header
LB: loop body
LE: loop exit
PB: predicated region body
PF: predicated region fallthrough
CT: control target
= control target key end

     0   :  { %vm39_vm0 = vcmask 1043456   ;;  %vm35_vm1 = vcmask 64512   ;;  %s261_s0 = inlined_call_operand.vmem [shape: f32[8,8], index: 0, kind: input, shape index: {}]   ;;  %s262_s1 = inlined_call_operand.vmem [shape: bf16[8,16], index: 1, kind: input, shape index: {}]   ;;  %s263_s2 = inlined_call_operand.vmem [shape: f32[1,16], index: 2, kind: input, shape index: {}]   ;;  %s264_s3 = inlined_call_operand.vmem [shape: bf16[16,32], index: 3, kind: input, shape index: {}]   ;;  %s265_s4 = inlined_call_operand.vmem [shape: f32[1,32], index: 4, kind: input, shape index: {}]   ;;  %s266_s5 = inlined_call_operand.vmem [shape: bf16[32,16], index: 5, kind: input, shape index: {}]   ;;  %s267_s6 = inlined_call_operand.vmem [shape: f32[1,16], index: 6, kind: input, shape index: {}]   ;;  %s268_s7 = inlined_call_operand.hbm [shape: f32[8,16], index: 7, kind: output, shape index: {}]  }
   0x1   :  { %v30_v0 = vld [vmem:[%s262_s1] sm:$0xf] }
   0x2   :  { %v28_v1 = vld [vmem:[%s261_s0] sm:$0xff]  ;;  %v41_v2 = vsel %vm39_vm0, %v30_v0, 0 }
   0x3   :  { %v29_v3 = vpack.c.bf16 %v28_v1, %v28_v1  ;;  %50 = vmatpush.bf16.msra.mxu0 %v41_v2 }
   0x4   :  { %12 = vsyncpa [#allocation3], 0  ;;  %v158_v4 = vld [vmem:[%s264_s3] sm:$0xff]  ;;  %vm70_vm2 = vcmask 130048   ;;  %v160_v11 = vld [vmem:[%s266_s5 + $0x8] sm:$0xff]  ;;  %vm109_vm3 = vcmask 261120  }
   0x5   :  { %81 = vmatpush.bf16.msra.mxu1 %v158_v4  ;;  %v162_v5 = vld [vmem:[%s263_s2] ss:$0 sm:$0xff]  ;;  %119 = vmatpush.bf16.msra.mxu2 %v160_v11  ;;  %s191_s13 = smov [#allocation2]   ;;  %s134_s16 = sshll.u32 %s268_s7, 4  ;;  %s135_s16 = int_to_ptr.hbm [resolvable:$true] %s134_s16 }
   0x6   :  { %143 = vmatmul.msk.bf16.vlgmr.msra.gmra.mxu0 %vm35_vm1, %v29_v3  ;;  %v159_v12 = vld [vmem:[%s266_s5] sm:$0xff]  ;;  %s132_s14 = sshll.u32 %s191_s13, 4  ;;  %s133_s14 = int_to_ptr.vmem [resolvable:$true] %s132_s14 }
   0x7   :  { %v163_v13 = vld [vmem:[%s265_s4] ss:$0 sm:$0xff] }
   0x8   :  { %v164_v19 = vld [vmem:[%s267_s6] ss:$0 sm:$0xff] }
   0x9   :  { %120 = vmatpush.bf16.msra.mxu2 %v159_v12 }
  0x83   :  { %v52_v6 = vpop.f32.mrf.mxu0 }
  0x84   :  { %v53_v7 = vadd.f32 %v162_v5, %v52_v6 }
  0x86   :  { %v56_v8 = vmax.f32 %v53_v7, 0.0 }
  0x88   :  { %v57_v9 = vpack.c.bf16 %v56_v8, %v56_v8 }
  0x8a   :  { %148 = vmatmul.msk.bf16.vlgmr.msra.gmra.mxu1 %vm70_vm2, %v57_v9 }
  0x8b   :  { %v54_v10 = vpop.f32.mrf.mxu0 }
 0x107   :  { %v83_v14 = vpop.f32.mrf.mxu1 }
 0x108   :  { %v84_v15 = vadd.f32 %v163_v13, %v83_v14 }
 0x10a   :  { %v87_v16 = vmax.f32 %v84_v15, 0.0 }
 0x10c   :  { %v88_v17 = vpack.c.bf16 %v87_v16, %v87_v16 }
 0x10e   :  { %157 = vmatmul.msk.bf16.vlgmr.msra.gmra.mxu2 %vm109_vm3, %v88_v17 }
 0x10f   :  { %v85_v18 = vpop.f32.mrf.mxu1 }
 0x191   :  { %v122_v20 = vpop.f32.mrf.mxu2 }
 0x192   :  { %v123_v21 = vadd.f32 %v164_v19, %v122_v20 }
 0x194   :  { %126 = vst.msk [vmem:[#allocation2] sm:$0xff] %vm70_vm2, %v123_v21 }
 0x195   :  { %137 = dma.vmem_to_hbm [thread:$0]  %s133_s14, 128, %s135_s16, [#allocation3]  }
 0x199   :  { %v124_v22 = vpop.f32.mrf.mxu2 }
 0x19a   :  { %189 = dma.done.wait [#allocation3], 128  }
 0x19b   :  { %190 = vsyncadd [#allocation3], 4294967168 }
 0x19c   :  { %142 = vsyncpa [#allocation3], 1 }

</bundles_post_ra>
